<compile_context>
chip_gen: v7x
topology: tpu7x:2x2x1
jax: 0.10.0
libtpu: 0.0.40
codegen_flags: <defaults>
</compile_context>

<pallas_src>
import functools

import numpy as np

import jax
import jax.numpy as jnp
from jax import lax
from jax.experimental import pallas as pl
from jax.experimental.pallas import tpu as pltpu


# --------------------------------------------------------------------------
# Kernels
# --------------------------------------------------------------------------
def _sa_matmul_kernel(x_ref, m_ref, b_ref, o_ref):
    """Small-HW path: conv folded into a single bf16 MXU matmul.

    x_ref: (TB, C, HWp) VMEM input block
    m_ref: (2*HWp, HWp) VMEM bf16 folded conv matrix (rows = [avg | max])
    b_ref: (1,)         SMEM f32 conv bias
    o_ref: (TB, C, HWp) VMEM output block
    """
    x = x_ref[...]                                          # input dtype, no f32 copy
    inv_c = 1.0 / x.shape[1]
    avg = jnp.sum(x, axis=1, dtype=jnp.float32) * inv_c     # (TB, HWp) f32 accumulate
    mx = jnp.max(x, axis=1).astype(jnp.float32)             # max in native dtype
    # Fuse the two matmuls into one: concat along lanes -> (TB, 2*HWp) bf16 LHS.
    lhs = jnp.concatenate([avg, mx], axis=-1).astype(jnp.bfloat16)
    acc = jnp.dot(lhs, m_ref[...],
                  preferred_element_type=jnp.float32) + b_ref[0]   # (TB, HWp) f32
    att = jax.nn.sigmoid(acc)                                # EUP
    o_ref[...] = (x * att[:, None, :].astype(x.dtype)).astype(o_ref.dtype)


def _make_roll_kernel(W, K, HWp, roll_matches_jnp):
    """Large-HW path: conv as K^2 lane-rolls + masked-tap FMAs (no (HW,HW) matrix).

    wm_ref holds, per tap t and output position p, weight[t] * valid_mask[t, p],
    so zero padding of the conv is exact and no in-kernel iota/compares are needed.
    """
    P = K // 2
    taps = []
    for c in range(2):
        for ki in range(K):
            for kj in range(K):
                off = (ki - P) * W + (kj - P)         # want shifted[p] = map[p + off]
                shift = (-off) % HWp if roll_matches_jnp else off % HWp
                taps.append((c, (c * K + ki) * K + kj, shift))

    def kernel(x_ref, wm_ref, b_ref, o_ref):
        x = x_ref[...]                                        # (TB, C, HWp)
        inv_c = 1.0 / x.shape[1]
        maps = (jnp.sum(x, axis=1, dtype=jnp.float32) * inv_c,   # mean over C
                jnp.max(x, axis=1).astype(jnp.float32))          # max over C
        acc = jnp.zeros_like(maps[0]) + b_ref[0]
        for c, t, shift in taps:
            src = maps[c] if shift == 0 else pltpu.roll(maps[c], shift, axis=1)
            # roll -> XLU slot; FMA against the (1, HWp) masked tap weight -> VPU.
            acc = acc + src * wm_ref[t:t + 1, :]
        att = jax.nn.sigmoid(acc)
        o_ref[...] = (x * att[:, None, :].astype(x.dtype)).astype(o_ref.dtype)

    return kernel


# --------------------------------------------------------------------------
# Constant-operand construction (wrapper side, trace time)
# --------------------------------------------------------------------------
def _fold_conv_matrix(weight, H, W, HWp):
    """Fold a (1, 2, K, K) conv weight into one (2*HWp, HWp) bf16 matrix M such
    that concat([avg_flat, max_flat]) @ M reproduces the zero-padded 'same'
    cross-correlation on the row-major flattened (lane-padded) spatial map.
    Built with a single scatter-add over the ~2*K^2*HW nonzeros."""
    K = weight.shape[-1]
    P = K // 2
    ii, jj = np.meshgrid(np.arange(H), np.arange(W), indexing="ij")
    dst = (ii * W + jj).reshape(-1)
    rows, cols, taps = [], [], []
    for c in range(2):
        for ki in range(K):
            for kj in range(K):
                di, dj = ki - P, kj - P
                si, sj = ii + di, jj + dj
                valid = ((si >= 0) & (si < H) & (sj >= 0) & (sj < W)).reshape(-1)
                src = (si * W + sj).reshape(-1)[valid]
                rows.append(c * HWp + src)
                cols.append(dst[valid])
                taps.append(np.full(src.shape[0], (c * K + ki) * K + kj, np.int32))
    rows = np.concatenate(rows)
    cols = np.concatenate(cols)
    taps = np.concatenate(taps)
    vals = weight.astype(jnp.float32).reshape(-1)[taps]
    m = jnp.zeros((2 * HWp, HWp), jnp.float32).at[rows, cols].add(vals)
    return m.astype(jnp.bfloat16)


def _masked_tap_weights(weight, H, W, HWp):
    """(2*K*K, HWp) f32: per-tap conv weight pre-multiplied by its zero-padding
    validity mask at every (lane-padded) output position."""
    K = weight.shape[-1]
    P = K // 2
    HW = H * W
    p = np.arange(HWp)
    row, col = p // W, p % W
    masks = np.zeros((2 * K * K, HWp), np.float32)
    for c in range(2):
        for ki in range(K):
            for kj in range(K):
                di, dj = ki - P, kj - P
                m = ((row + di >= 0) & (row + di < H) &
                     (col + dj >= 0) & (col + dj < W) & (p < HW))
                masks[(c * K + ki) * K + kj] = m
    w = weight.astype(jnp.float32).reshape(2 * K * K, 1)
    return jnp.asarray(masks) * w


@functools.lru_cache(maxsize=None)
def _pltpu_roll_matches_jnp_roll():
    """One-off probe (cached): True iff pltpu.roll(x, s, axis) == jnp.roll(x, s, axis)
    on this backend, making the shifted-add conv robust to the hardware rotate
    convention.  Must run outside a jit trace (inspects a concrete value)."""
    def k(x_ref, o_ref):
        o_ref[...] = pltpu.roll(x_ref[...], 1, axis=1)
    x = jnp.broadcast_to(jnp.arange(128, dtype=jnp.int32)[None, :], (8, 128))
    y = pl.pallas_call(k, out_shape=jax.ShapeDtypeStruct((8, 128), jnp.int32))(x)
    return int(y[0, 0]) == 127


# --------------------------------------------------------------------------
# Wrapper
# --------------------------------------------------------------------------
def spatial_attention(x, weight, bias, *, conv_mode="auto", matmul_hw_limit=1024):
    """x: (B, C, H, W), weight: (1, 2, K, K), bias: (1,).  Returns x * sigmoid(conv)."""
    B, C, H, W = x.shape
    O, I, K, K2 = weight.shape
    assert O == 1 and I == 2 and K == K2
    HW = H * W
    HWp = ((HW + 127) // 128) * 128           # lane-dense spatial dim (unmasked stores)

    if conv_mode == "auto":
        # Dense folded matmul only while the (2*HWp, HWp) matrix is small and the
        # HW/K^2 FLOP inflation is cheaper than K^2 VPU/XLU shifted-adds.
        # (Lower this limit on v5e where the MXU is ~4.7x slower.)
        conv_mode = "matmul" if HWp <= matmul_hw_limit else "roll"

    # ---- batch tiling: ~4 MiB input blocks, >=2 grid steps, sublane-aligned ----
    itemsize = x.dtype.itemsize
    bytes_per_batch = C * HWp * itemsize
    tb = max(1, (4 << 20) // max(bytes_per_batch, 1))   # amortize ~0.35us/step overhead
    tb = min(tb, 256)                                   # matmul-M / VMEM cap
    if B >= 2:
        tb = min(tb, (B + 1) // 2)                      # >=2 steps -> both v7x TCs busy
    tb = min(tb, B)
    if tb >= 8:
        tb = (tb // 8) * 8                              # sublane-aligned MXU M-dim
    grid_b = pl.cdiv(B, tb)
    B_pad = grid_b * tb                                 # pad B instead of shrinking TB

    # ---- lane / batch zero-padding (exactly preserves the conv semantics) ----
    x_flat = x.reshape(B, C, HW)
    if B_pad != B or HWp != HW:
        x_flat = jnp.pad(x_flat, ((0, B_pad - B), (0, 0), (0, HWp - HW)))

    b_smem = bias.astype(jnp.float32).reshape(1)

    if conv_mode == "matmul":
        const_arg = _fold_conv_matrix(weight, H, W, HWp)        # (2*HWp, HWp) bf16
        const_spec = pl.BlockSpec((2 * HWp, HWp), lambda i: (0, 0))
        kernel = _sa_matmul_kernel
    else:
        const_arg = _masked_tap_weights(weight, H, W, HWp)      # (2*K*K, HWp) f32
        const_spec = pl.BlockSpec((2 * K * K, HWp), lambda i: (0, 0))
        kernel = _make_roll_kernel(W, K, HWp, _pltpu_roll_matches_jnp_roll())

    # ---- VMEM budget from actual block sizes (double-buffered io + constant) ----
    io_block = tb * C * HWp * itemsize
    const_bytes = const_arg.size * const_arg.dtype.itemsize
    temps_bytes = tb * (C + 8) * HWp * 4                 # in-kernel f32 temporaries
    vmem_limit = int(min(110 << 20,
                         4 * io_block + 2 * const_bytes + temps_bytes + (8 << 20)))

    out_flat = pl.pallas_call(
        kernel,
        out_shape=jax.ShapeDtypeStruct((B_pad, C, HWp), x.dtype),
        grid=(grid_b,),
        in_specs=[
            pl.BlockSpec((tb, C, HWp), lambda i: (i, 0, 0)),
            const_spec,   # constant index_map -> fetched once, stays VMEM-resident
            pl.BlockSpec(memory_space=pltpu.MemorySpace.SMEM),
        ],
        out_specs=pl.BlockSpec((tb, C, HWp), lambda i: (i, 0, 0)),
        compiler_params=pltpu.CompilerParams(
            dimension_semantics=("parallel",),   # independent batch tiles
            vmem_limit_bytes=vmem_limit,
        ),
    )(x_flat, const_arg, b_smem)

    return out_flat[:B, :, :HW].reshape(B, C, H, W)


# --------------------------------------------------------------------------
# Self-test
# --------------------------------------------------------------------------
if __name__ == "__main__":
    key = jax.random.PRNGKey(0)
    kx, kw, kb = jax.random.split(key, 3)

    B, C, H, W = 2, 4, 16, 16
    K = 7
    x = jax.random.normal(kx, (B, C, H, W), dtype=jnp.float32)

    # deterministic Conv2d(2, 1, 7, padding=3) parameters (PyTorch-style uniform init)
    fan_in = 2 * K * K
    bound = 1.0 / (fan_in ** 0.5)
    weight = jax.random.uniform(kw, (1, 2, K, K), jnp.float32, -bound, bound)
    bias = jax.random.uniform(kb, (1,), jnp.float32, -bound, bound)

    # pure-JAX reference (same semantics as the PyTorch forward)
    avg = jnp.mean(x, axis=1, keepdims=True)
    mx = jnp.max(x, axis=1, keepdims=True)
    cat = jnp.concatenate([avg, mx], axis=1)
    conv = lax.conv_general_dilated(
        cat, weight, window_strides=(1, 1),
        padding=((K // 2, K // 2), (K // 2, K // 2)),
        dimension_numbers=("NCHW", "OIHW", "NCHW"),
        precision=lax.Precision.HIGHEST,
    ) + bias.reshape(1, 1, 1, 1)
    ref = x * jax.nn.sigmoid(conv)

    # Exercise both conv paths: the fused-matmul path (used at small HW) and the
    # roll-based path (used at large HW, forced here on the small shape).
    for mode in ("matmul", "roll"):
        out = jax.block_until_ready(spatial_attention(x, weight, bias, conv_mode=mode))
        assert out.shape == ref.shape and out.dtype == ref.dtype
        max_err = float(jnp.max(jnp.abs(out - ref)))
        assert jnp.allclose(out, ref, atol=2e-2, rtol=2e-2), \
            f"{mode}: max abs err = {max_err}"

    print("KERNEL_OK")
</pallas_src>

<mosaic_0001>
module attributes {stable_mosaic.version = 11 : i64} {
  func.func @_sa_matmul_kernel(%arg0: i32, %arg1: memref<1x4x256xf32, #tpu.memory_space<vmem>>, %arg2: memref<512x256xbf16, #tpu.memory_space<vmem>>, %arg3: memref<1xf32, #tpu.memory_space<smem>>, %arg4: memref<1x4x256xf32, #tpu.memory_space<vmem>>) attributes {dimension_semantics = [#tpu.dimension_semantics<parallel>], iteration_bounds = array<i64: 2>, scalar_prefetch = 0 : i64, scratch_operands = 0 : i64, tpu.core_type = #tpu.core_type<tc>, window_params = [{transform_indices = @transform_0, window_bounds = array<i64: 1, 4, 256>}, {pipeline_mode = #tpu.pipeline_mode<synchronous>, transform_indices = @transform_1, window_bounds = array<i64: 512, 256>}, {transform_indices = @transform_2, window_bounds = array<i64: 1>}, {transform_indices = @transform_3, window_bounds = array<i64: 1, 4, 256>}]} {
    %c0 = arith.constant 0 : index
    %c0_0 = arith.constant 0 : index
    %c0_1 = arith.constant 0 : index
    %0 = vector.load %arg1[%c0, %c0_0, %c0_1] : memref<1x4x256xf32, #tpu.memory_space<vmem>>, vector<1x4x256xf32>
    %cst = arith.constant dense<0.000000e+00> : vector<1x256xf32>
    %1 = vector.multi_reduction <add>, %0, %cst [1] : vector<1x4x256xf32> to vector<1x256xf32>
    %cst_2 = arith.constant 2.500000e-01 : f32
    %2 = vector.broadcast %cst_2 : f32 to vector<1x256xf32>
    %3 = arith.mulf %1, %2 : vector<1x256xf32>
    %cst_3 = arith.constant dense<0xFF800000> : vector<1x256xf32>
    %4 = vector.multi_reduction <maximumf>, %0, %cst_3 [1] : vector<1x4x256xf32> to vector<1x256xf32>
    %5 = tpu.concatenate %3, %4 in 1 : vector<1x256xf32>, vector<1x256xf32> -> vector<1x512xf32>
    %6 = arith.truncf %5 : vector<1x512xf32> to vector<1x512xbf16>
    %c0_4 = arith.constant 0 : index
    %c0_5 = arith.constant 0 : index
    %7 = vector.load %arg2[%c0_4, %c0_5] : memref<512x256xbf16, #tpu.memory_space<vmem>>, vector<512x256xbf16>
    %cst_6 = arith.constant dense<0.000000e+00> : vector<1x256xf32>
    %8 = tpu.matmul %6, %7, %cst_6 {dimension_numbers = #tpu.dot_dimension_numbers<[1], [0], [0], [1], [0, 0, 1, 1], [], []>} : vector<1x512xbf16>, vector<512x256xbf16>, vector<1x256xf32> -> vector<1x256xf32>
    %c0_7 = arith.constant 0 : index
    %9 = memref.load %arg3[%c0_7] : memref<1xf32, #tpu.memory_space<smem>>
    %10 = vector.broadcast %9 : f32 to vector<1x256xf32>
    %11 = arith.addf %8, %10 : vector<1x256xf32>
    %12 = arith.negf %11 : vector<1x256xf32>
    %13 = math.exp %12 : vector<1x256xf32>
    %cst_8 = arith.constant 1.000000e+00 : f32
    %14 = vector.broadcast %cst_8 : f32 to vector<1x256xf32>
    %15 = arith.addf %14, %13 : vector<1x256xf32>
    %16 = arith.divf %14, %15 : vector<1x256xf32>
    %17 = vector.shape_cast %16 : vector<1x256xf32> to vector<1x1x256xf32>
    %18 = vector.broadcast %17 : vector<1x1x256xf32> to vector<1x4x256xf32>
    %19 = arith.mulf %0, %18 : vector<1x4x256xf32>
    %c0_9 = arith.constant 0 : index
    %c0_10 = arith.constant 0 : index
    %c0_11 = arith.constant 0 : index
    %20 = vector.load %arg4[%c0_9, %c0_10, %c0_11] : memref<1x4x256xf32, #tpu.memory_space<vmem>>, vector<1x4x256xf32>
    tpu.vector_store %arg4[%c0_9, %c0_10, %c0_11], %19 {strides = array<i32>} : memref<1x4x256xf32, #tpu.memory_space<vmem>>, vector<1x4x256xf32>,
    return
  }
  func.func @transform_0(%arg0: i32) -> (i32, i32, i32) {
    %c0_i32 = arith.constant 0 : i32
    %c0_i32_0 = arith.constant 0 : i32
    %c0_i32_1 = arith.constant 0 : i32
    return %arg0, %c0_i32, %c0_i32_0 : i32, i32, i32
  }
  func.func @transform_1(%arg0: i32) -> (i32, i32) {
    %c0_i32 = arith.constant 0 : i32
    %c0_i32_0 = arith.constant 0 : i32
    %c0_i32_1 = arith.constant 0 : i32
    return %c0_i32, %c0_i32_0 : i32, i32
  }
  func.func @transform_2(%arg0: i32) -> i32 {
    %c0_i32 = arith.constant 0 : i32
    %c0_i32_0 = arith.constant 0 : i32
    return %c0_i32 : i32
  }
  func.func @transform_3(%arg0: i32) -> (i32, i32, i32) {
    %c0_i32 = arith.constant 0 : i32
    %c0_i32_0 = arith.constant 0 : i32
    %c0_i32_1 = arith.constant 0 : i32
    return %arg0, %c0_i32, %c0_i32_0 : i32, i32, i32
  }
}

</mosaic_0001>

<bundles_post_ra>
// kernel: tpu_custom_call.1
= control target key start
LH: loop header
LB: loop body
LE: loop exit
PB: predicated region body
PF: predicated region fallthrough
CT: control target
= control target key end

     0   :  { %s1455_s0 = inlined_call_operand.hbm [shape: f32[2,4,256], index: 0, kind: input, shape index: {}]   ;;  %s1456_s1 = inlined_call_operand.hbm [shape: bf16[512,256], index: 1, kind: input, shape index: {}]   ;;  %s1457_s2 = inlined_call_operand.<no memory space> [shape: f32[1], index: 2, kind: input, shape index: {}]   ;;  %s1458_s3 = inlined_call_operand.hbm [shape: f32[2,4,256], index: 3, kind: output, shape index: {}]  }
   0x1   :  { %8 = sst [smem:[#allocation2]] %s1457_s2 }
   0x2   :  { %9 = vsyncpa [#allocation4], 0 }
   0x3   :  { %11 = vsyncpa [#allocation4 + $0x1], 0 }
   0x4   :  { %12 = vsyncpa [#allocation7], 0 }
   0x5   :  { %13 = vsyncpa [#allocation5], 0 }
   0x6   :  { %15 = vsyncpa [#allocation5 + $0x1], 0  ;;  %s1241_s14 = smov 0   ;;  %s1243_s15 = smov 0  }
   0x7   :  { %s1245_s16 = smov 0   ;;  %s1247_s17 = smov 0  }
   0x8 LB: > { %s1262_s2 = sadd.s32 4294967295, %s1211_s17   ;;  %s831_s18 = sadd.s32 4294967294, %s1211_s17   ;;  %s1211_s17 = sphi %s1247_s17, %s1478_s17   ;;  %s1207_s16 = sphi %s1245_s16, %s1477_s16   ;;  %s1203_s15 = sphi %s1243_s15, %s1476_s15   ;;  %s1199_s14 = sphi %s1241_s14, %s1475_s14  }
   0x9   : > { %p41_p0 = scmp.ne.s32.totalorder %s1203_s15, %s1199_s14  ;;  %p1459_p1 = scmp.eq.s32.totalorder %s1262_s2, 0 }
   0xa   : > { %p113_p3 = scmp.eq.s32.totalorder %s831_s18, 1  ;;  %p832_p5 = scmp.ge.s32.totalorder %s1211_s17, 1 }
   0xb   : > { %p1271_p4 = por %p1459_p1, %p41_p0  ;;  %p120_p7 = scmp.lt.s32.totalorder %s1211_s17, 3 }
   0xc   : > { %p1276_p6 = por %p113_p3, %p41_p0  ;;  %s1213_s22 = smov [#allocation6]  }
   0xd   : > { %s1462_s19 = scalar_select %p1271_p4, 1, 0 }
   0xe   : > { %s1463_s20 = scalar_select %p1276_p6, 1, 0 }
   0xf   : > { %p1281_p8 = pnand %p832_p5, %p120_p7  ;;  %s132_s23 = sshll.u32 %s1213_s22, 4  ;;  %s1285_s23 = int_to_ptr.vmem [resolvable:$true] %s132_s23 }
  0x10   : > { %s1297_s25 = sadd.s32 1, %s1211_s17   ;;  %s28_s26 = sadd.s32 1, %s1207_s16 }
  0x11   : > { %s1464_s21 = scalar_select %p1281_p8, 1, 0 }
  0x12   : > { %p927_p9 = pneg %p1281_p8  ;;  %s25_s27 = ssub.s32 %s1211_s17, %s1297_s25 }
  0x13   : > { %s1083_s30 = scalar_lea.hbm %s1456_s1, 8192 }
  0x14   : > { %p1292_p11 = pnand %p927_p9, %p1459_p1  ;;  %p1084_p12 = scmp.ne.s32.totalorder %s1456_s1, %s1083_s30 }
  0x15   : > { %p1090_p5 = scmp.lt.u32.totalorder %s1083_s30, %s1456_s1 }
  0x16   : > { %p1085_p13 = pneg %p1292_p11 }
  0x18   : > { %p1086_p0 = pnand %p1085_p13, %p1084_p12 }
  0x1a   : > { %p1087_p3 = pneg %p1086_p0 }
  0x1c   : > { %p1092_p7 = pnand %p1090_p5, %p1087_p3 }
  0x1e   : > { %1095 = shalt.err (!%p1092_p7)
}
  0x1f   : > { %s1096_s8 = scalar_lea.vmem %s1285_s23, 8192  ;;  %p1104_p2 = scmp.lt.s32.totalorder %s1285_s23, %s1285_s23 }
  0x20   : > { %p1097_p9 = scmp.ne.s32.totalorder %s1285_s23, %s1096_s8  ;;  %p1105_p6 = scmp.lt.s32.totalorder %s1096_s8, %s1096_s8 }
  0x22   : > { %p1099_p10 = pnand %p1097_p9, %p1085_p13  ;;  %p1106_p4 = por %p1105_p6, %p1104_p2 }
  0x24   : > { %p1100_p1 = pneg %p1099_p10 }
  0x26   : > { %p1107_p8 = pnand %p1106_p4, %p1100_p1 }
  0x28   : > { %1110 = shalt.err (!%p1107_p8)
}
  0x29   : > { %s1214_s9 = smov 128   ;;  %s1215_s10 = smov 8  }
  0x2a   : > { %930 = dma.hbm_to_vmem [thread:$0]  (!%p1292_p11), %s1456_s1, 8192, %s1285_s23, [#allocation7], %s1214_s9, %s1214_s9, %s1215_s10  }
  0x2b   : > { %p26_p2 = scmp.eq.s32.totalorder %s25_s27, 0  ;;  %p35_p1 = scmp.ne.s32.totalorder %s1207_s16, %s1203_s15 }
  0x2c   : > { %p36_p4 = scmp.eq.s32.totalorder %s1211_s17, 0  ;;  %p940_p6 = scmp.lt.s32.totalorder %s1211_s17, 2 }
  0x2d   : > { %s1328_s13 = scalar_select %p26_p2, %s1207_s16, %s28_s26  }
  0x2e   : > { %p37_p8 = por %p36_p4, %p35_p1  ;;  %p1466_p10 = scmp.eq.s32.totalorder %s1262_s2, 1 }
  0x2f   : > { %s149_s22 = sand.u32 1, %s1207_s16   ;;  %s913_s28 = sshll.u32 %s1211_s17, 7 }
  0x30   : > { %p1332_p12 = por %p1466_p10, %p35_p1  ;;  %s835_s29 = sshll.u32 %s149_s22, 3 }
  0x31   : > { %s1341_s4 = scalar_lea.hbm %s1455_s0, %s913_s28  ;;  %s153_s23 = scalar_lea.vmem [#allocation3], %s835_s29 }
  0x32   : > { %s161_s26 = sshll.u32 %s153_s23, 4  ;;  %p1343_p11 = pnand %p940_p6, %p37_p8  ;;  %s1347_s26 = int_to_ptr.vmem [resolvable:$true] %s161_s26 }
  0x33   : > { %s150_s5 = scalar_lea.sflag [#allocation4], %s149_s22  ;;  %s1111_s6 = scalar_lea.hbm %s1341_s4, 128 }
  0x34   : > { %p1112_p13 = scmp.ne.s32.totalorder %s1341_s4, %s1111_s6  ;;  %p1113_p0 = pneg %p1343_p11 }
  0x35   : > { %s1116_s9 = scalar_lea.hbm %s1455_s0, 256  ;;  %p1117_p7 = scmp.lt.u32.totalorder %s1341_s4, %s1455_s0 }
  0x36   : > { %p1114_p3 = pnand %p1113_p0, %p1112_p13  ;;  %p1118_p9 = scmp.lt.u32.totalorder %s1116_s9, %s1111_s6 }
  0x37   : > { %p1120_p1 = scmp.lt.u32.totalorder %s1111_s6, %s1341_s4 }
  0x38   : > { %p1115_p5 = pneg %p1114_p3  ;;  %p1119_p2 = por %p1118_p9, %p1117_p7 }
  0x3a   : > { %p1121_p4 = por %p1120_p1, %p1119_p2 }
  0x3c   : > { %p1122_p6 = pnand %p1121_p4, %p1115_p5 }
  0x3e   : > { %1125 = shalt.err (!%p1122_p6)
}
  0x3f   : > { %s1126_s12 = scalar_lea.vmem %s1347_s26, 128  ;;  %s1216_s22 = smov [#allocation3]  }
  0x40   : > { %p1127_p8 = scmp.ne.s32.totalorder %s1347_s26, %s1126_s12  ;;  %s1131_s28 = sshll.u32 %s1216_s22, 4  ;;  %s1132_s28 = int_to_ptr.vmem [resolvable:$false] %s1131_s28 }
  0x41   : > { %s1133_s29 = scalar_lea.vmem %s1132_s28, 256  ;;  %p1134_p3 = scmp.lt.s32.totalorder %s1347_s26, %s1132_s28 }
  0x42   : > { %p1129_p10 = pnand %p1127_p8, %p1113_p0  ;;  %p1135_p7 = scmp.lt.s32.totalorder %s1133_s29, %s1126_s12 }
  0x44   : > { %p1130_p13 = pneg %p1129_p10  ;;  %p1136_p9 = por %p1135_p7, %p1134_p3 }
  0x46   : > { %p1137_p2 = pnand %p1136_p9, %p1130_p13 }
  0x48   : > { %1140 = shalt.err (!%p1137_p2)
}
  0x49   : > { %934 = dma.hbm_to_vmem [thread:$0]  (!%p1343_p11), %s1341_s4, 128, %s1347_s26, %s150_s5  }
  0x4a   : > { %p1469_p5 = scmp.ne.s32.totalorder %s1464_s21, 0 }
  0x4b   : > { %s1377_s24 = sand.u32 (!%p1469_p5), 1, %s1203_s15   ;;  %p1470_p0 = scmp.ne.s32.totalorder (!%p1469_p5), %s1462_s19, 0 }
  0x4c   : > { %170 = sbr.rel (%p1469_p5) target bundleno = 415 (0x19f), region = 32  ;;  %s839_s30 = sshll.u32 (!%p1469_p5), %s1377_s24, 3 }
  0x4d   : > { %s173_s23 = scalar_lea.sflag (!%p1469_p5), [#allocation4], %s1377_s24  ;;  %s1383_s6 = scalar_lea.vmem (!%p1469_p5), [#allocation3], %s839_s30 }
  0x53   : > { %1186 = dma.done.wait (%p1470_p0), %s173_s23, 128  }
  0x54   : > { %1188 = vsyncadd (%p1470_p0), %s173_s23, 4294967168  ;;  %p1471_p11 = scmp.eq.s32.totalorder %s1262_s2, 0 }
  0x56   : > { %1190 = dma.done.wait (%p1471_p11), [#allocation7], 8192   ;;  %p1472_p1 = pmov %p1471_p11 }
  0x57   : > { %v978_v0 = vld [vmem:[#allocation6 + $0x4] ss:$8 sps:$4 sm:$0xff]   ;;  %v982_v2 = vld [vmem:[#allocation6] ss:$8 sps:$4 sm:$0xff]   ;;  %v984_v4 = vld [vmem:[#allocation6 + $0x14] ss:$8 sps:$4 sm:$0xff]  }
  0x58   : > { %1192 = vsyncadd (%p1472_p1), [#allocation7], 4294959104  ;;  %v980_v1 = vld [vmem:[#allocation6 + $0x104] ss:$8 sps:$4 sm:$0xff]   ;;  %628 = vmatprep.subr.bf16.mxu1 %v978_v0  ;;  %v983_v3 = vld [vmem:[#allocation6 + $0x100] ss:$8 sps:$4 sm:$0xff]  }
  0x59   : > { %669 = vmatprep.subr.bf16.mxu0 %v980_v1  ;;  %629 = vmatpush1.bf16.msra.mxu1 %v982_v2  ;;  %v986_v5 = vld [vmem:[#allocation6 + $0x114] ss:$8 sps:$4 sm:$0xff]   ;;  %v988_v6 = vld [vmem:[#allocation6 + $0x10] ss:$8 sps:$4 sm:$0xff]   ;;  %v990_v8 = vld [vmem:[#allocation6 + $0x24] ss:$8 sps:$4 sm:$0xff]  }
  0x5a   : > { %670 = vmatpush1.bf16.msra.mxu0 %v983_v3  ;;  %630 = vmatprep.subr.bf16.mxu1 %v984_v4  ;;  %v989_v7 = vld [vmem:[#allocation6 + $0x110] ss:$8 sps:$4 sm:$0xff]   ;;  %v992_v9 = vld [vmem:[#allocation6 + $0x124] ss:$8 sps:$4 sm:$0xff]   ;;  %v994_v10 = vld [vmem:[#allocation6 + $0x20] ss:$8 sps:$4 sm:$0xff]  }
  0x5b   : > { %671 = vmatprep.subr.bf16.mxu0 %v986_v5  ;;  %v995_v11 = vld [vmem:[#allocation6 + $0x120] ss:$8 sps:$4 sm:$0xff]   ;;  %v996_v12 = vld [vmem:[#allocation6 + $0x34] ss:$8 sps:$4 sm:$0xff]   ;;  %v1000_v14 = vld [vmem:[#allocation6 + $0x30] ss:$8 sps:$4 sm:$0xff]  }
  0x5c   : > { %v998_v13 = vld [vmem:[#allocation6 + $0x134] ss:$8 sps:$4 sm:$0xff]   ;;  %v1001_v15 = vld [vmem:[#allocation6 + $0x130] ss:$8 sps:$4 sm:$0xff]   ;;  %v1002_v16 = vld [vmem:[#allocation6 + $0x44] ss:$8 sps:$4 sm:$0xff]  }
  0x5d   : > { %631 = vmatpush1.bf16.msra.mxu1 %v988_v6  ;;  %v1004_v17 = vld [vmem:[#allocation6 + $0x144] ss:$8 sps:$4 sm:$0xff]   ;;  %v1006_v18 = vld [vmem:[#allocation6 + $0x40] ss:$8 sps:$4 sm:$0xff]   ;;  %v1008_v20 = vld [vmem:[#allocation6 + $0x54] ss:$8 sps:$4 sm:$0xff]  }
  0x5e   : > { %672 = vmatpush1.bf16.msra.mxu0 %v989_v7  ;;  %632 = vmatprep.subr.bf16.mxu1 %v990_v8  ;;  %v1007_v19 = vld [vmem:[#allocation6 + $0x140] ss:$8 sps:$4 sm:$0xff]   ;;  %v1010_v21 = vld [vmem:[#allocation6 + $0x154] ss:$8 sps:$4 sm:$0xff]   ;;  %v1012_v22 = vld [vmem:[#allocation6 + $0x50] ss:$8 sps:$4 sm:$0xff]  }
  0x5f   : > { %673 = vmatprep.subr.bf16.mxu0 %v992_v9  ;;  %v1013_v23 = vld [vmem:[#allocation6 + $0x150] ss:$8 sps:$4 sm:$0xff]   ;;  %v1014_v24 = vld [vmem:[#allocation6 + $0x64] ss:$8 sps:$4 sm:$0xff]   ;;  %v1018_v26 = vld [vmem:[#allocation6 + $0x60] ss:$8 sps:$4 sm:$0xff]  }
  0x60   : > { %v1016_v25 = vld [vmem:[#allocation6 + $0x164] ss:$8 sps:$4 sm:$0xff]   ;;  %v1019_v27 = vld [vmem:[#allocation6 + $0x160] ss:$8 sps:$4 sm:$0xff]   ;;  %v1020_v28 = vld [vmem:[#allocation6 + $0x74] ss:$8 sps:$4 sm:$0xff]  }
  0x61   : > { %633 = vmatpush1.bf16.msra.mxu1 %v994_v10  ;;  %v1022_v29 = vld [vmem:[#allocation6 + $0x174] ss:$8 sps:$4 sm:$0xff]   ;;  %v1024_v30 = vld [vmem:[#allocation6 + $0x70] ss:$8 sps:$4 sm:$0xff]   ;;  %v1026_v32 = vld [vmem:[#allocation6 + $0x84] ss:$8 sps:$4 sm:$0xff]  }
  0x62   : > { %674 = vmatpush1.bf16.msra.mxu0 %v995_v11  ;;  %634 = vmatprep.subr.bf16.mxu1 %v996_v12  ;;  %v1025_v31 = vld [vmem:[#allocation6 + $0x170] ss:$8 sps:$4 sm:$0xff]   ;;  %v1028_v33 = vld [vmem:[#allocation6 + $0x184] ss:$8 sps:$4 sm:$0xff]   ;;  %v1030_v34 = vld [vmem:[#allocation6 + $0x80] ss:$8 sps:$4 sm:$0xff]  }
  0x63   : > { %675 = vmatprep.subr.bf16.mxu0 %v998_v13  ;;  %v1031_v35 = vld [vmem:[#allocation6 + $0x180] ss:$8 sps:$4 sm:$0xff]   ;;  %v1032_v36 = vld [vmem:[#allocation6 + $0x94] ss:$8 sps:$4 sm:$0xff]   ;;  %v1036_v38 = vld [vmem:[#allocation6 + $0x90] ss:$8 sps:$4 sm:$0xff]  }
  0x64   : > { %v1034_v37 = vld [vmem:[#allocation6 + $0x194] ss:$8 sps:$4 sm:$0xff]   ;;  %v1037_v39 = vld [vmem:[#allocation6 + $0x190] ss:$8 sps:$4 sm:$0xff]   ;;  %v1038_v40 = vld [vmem:[#allocation6 + $0xa4] ss:$8 sps:$4 sm:$0xff]  }
  0x65   : > { %635 = vmatpush1.bf16.msra.mxu1 %v1000_v14  ;;  %v1040_v41 = vld [vmem:[#allocation6 + $0x1a4] ss:$8 sps:$4 sm:$0xff]   ;;  %v1042_v42 = vld [vmem:[#allocation6 + $0xa0] ss:$8 sps:$4 sm:$0xff]   ;;  %v1044_v44 = vld [vmem:[#allocation6 + $0xb4] ss:$8 sps:$4 sm:$0xff]  }
  0x66   : > { %676 = vmatpush1.bf16.msra.mxu0 %v1001_v15  ;;  %636 = vmatprep.subr.bf16.mxu1 %v1002_v16  ;;  %v1043_v43 = vld [vmem:[#allocation6 + $0x1a0] ss:$8 sps:$4 sm:$0xff]   ;;  %vm207_vm0 = vcmask 1043456   ;;  %v1046_v45 = vld [vmem:[#allocation6 + $0x1b4] ss:$8 sps:$4 sm:$0xff]   ;;  %s306_s19 = sld [smem:[#allocation2]] }
  0x67   : > { %677 = vmatprep.subr.bf16.mxu0 %v1004_v17  ;;  %v1394_v46 = vld [vmem:[%s1383_s6] sm:$0xff]  ;;  %v1050_v54 = vld [vmem:[#allocation6 + $0xc4] ss:$8 sps:$4 sm:$0xff]   ;;  %v1054_v62 = vld [vmem:[#allocation6 + $0xc0] ss:$8 sps:$4 sm:$0xff]   ;;  %s914_s21 = sshll.u32 %s1262_s2, 7 }
  0x68   : > { %v205_v47 = vcombine.high %v1394_v46, %v1394_v46  ;;  %v208_v48 = vsel %vm207_vm0, %v1394_v46, 0.0  ;;  %v224_v49 = vsel %vm207_vm0, %v1394_v46, -inf  ;;  %v1048_v50 = vld [vmem:[#allocation6 + $0xb0] ss:$8 sps:$4 sm:$0xff]   ;;  %v1052_v55 = vld [vmem:[#allocation6 + $0x1c4] ss:$8 sps:$4 sm:$0xff]   ;;  %s1411_s7 = scalar_lea.hbm %s1458_s3, %s914_s21 }
  0x69   : > { %637 = vmatpush1.bf16.msra.mxu1 %v1006_v18  ;;  %v1049_v51 = vld [vmem:[#allocation6 + $0x1b0] ss:$8 sps:$4 sm:$0xff]   ;;  %v209_v52 = vrot.slane %v208_v48, 4  ;;  %v225_v53 = vrot.slane %v224_v49, 4  ;;  %v1055_v63 = vld [vmem:[#allocation6 + $0x1c0] ss:$8 sps:$4 sm:$0xff]  }
  0x6a   : > { %678 = vmatpush1.bf16.msra.mxu0 %v1007_v19  ;;  %638 = vmatprep.subr.bf16.mxu1 %v1008_v20  ;;  %v215_v56 = vsel %vm207_vm0, %v205_v47, 0.0  ;;  %v231_v57 = vsel %vm207_vm0, %v205_v47, -inf  ;;  %v1056_v4 = vld [vmem:[#allocation6 + $0xd4] ss:$8 sps:$4 sm:$0xff]   ;;  %v1060_v10 = vld [vmem:[#allocation6 + $0xd0] ss:$8 sps:$4 sm:$0xff]  }
  0x6b   : > { %679 = vmatprep.subr.bf16.mxu0 %v1010_v21  ;;  %v216_v58 = vrot.slane %v215_v56, 4  ;;  %v232_v59 = vrot.slane %v231_v57, 4  ;;  %v210_v60 = vadd.f32 %v209_v52, %v208_v48  ;;  %v226_v61 = vmax.f32 %v224_v49, %v225_v53  ;;  %v1058_v5 = vld [vmem:[#allocation6 + $0x1d4] ss:$8 sps:$4 sm:$0xff]   ;;  %v1061_v11 = vld [vmem:[#allocation6 + $0x1d0] ss:$8 sps:$4 sm:$0xff]  }
  0x6c   : > { %v1062_v15 = vld [vmem:[#allocation6 + $0xe4] ss:$8 sps:$4 sm:$0xff]   ;;  %v1066_v21 = vld [vmem:[#allocation6 + $0xe0] ss:$8 sps:$4 sm:$0xff]   ;;  %s202_s4 = scalar_lea.vmem [#allocation8], %s839_s30  ;;  %s737_s8 = scalar_lea.sflag [#allocation5], %s1377_s24 }
  0x6d   : > { %639 = vmatpush1.bf16.msra.mxu1 %v1012_v22  ;;  %v217_v0 = vadd.f32 %v216_v58, %v215_v56  ;;  %v233_v1 = vmax.f32 %v231_v57, %v232_v59  ;;  %v211_v2 = vrot.slane %v210_v60, 2  ;;  %v227_v3 = vrot.slane %v226_v61, 2  ;;  %v1064_v16 = vld [vmem:[#allocation6 + $0x1e4] ss:$8 sps:$4 sm:$0xff]   ;;  %v1067_v22 = vld [vmem:[#allocation6 + $0x1e0] ss:$8 sps:$4 sm:$0xff]  }
  0x6e   : > { %680 = vmatpush1.bf16.msra.mxu0 %v1013_v23  ;;  %640 = vmatprep.subr.bf16.mxu1 %v1014_v24  ;;  %v722_v56 = vlaneseq  ;;  %s751_s26 = sshll.u32 %s202_s4, 4  ;;  %s1217_s2 = smov [#allocation8]   ;;  %s1413_s26 = int_to_ptr.vmem [resolvable:$true] %s751_s26 }
  0x6f   : > { %681 = vmatprep.subr.bf16.mxu0 %v1016_v25  ;;  %v218_v6 = vrot.slane %v217_v0, 2  ;;  %v234_v7 = vrot.slane %v233_v1, 2  ;;  %v212_v8 = vadd.f32 %v211_v2, %v210_v60  ;;  %v228_v9 = vmax.f32 %v226_v61, %v227_v3  ;;  %v1068_v25 = vld [vmem:[#allocation6 + $0xf4] ss:$8 sps:$4 sm:$0xff]   ;;  %s1141_s9 = scalar_lea.vmem %s1413_s26, 128  ;;  %s1145_s10 = sshll.u32 %s1217_s2, 4  ;;  %s1146_s10 = int_to_ptr.vmem [resolvable:$false] %s1145_s10 }
  0x70   : > { %v723_v57 = vshrl.u32 %v722_v56, 7  ;;  %p1142_p4 = scmp.ne.s32.totalorder %s1413_s26, %s1141_s9  ;;  %s1147_s11 = scalar_lea.vmem %s1146_s10, 256 }
  0x71   : > { %641 = vmatpush1.bf16.msra.mxu1 %v1018_v26  ;;  %v219_v12 = vadd.f32 %v218_v6, %v217_v0  ;;  %v235_v13 = vmax.f32 %v233_v1, %v234_v7  ;;  %v213_v14 = vrot.slane %v212_v8, 1  ;;  %v229_v20 = vrot.slane %v228_v9, 1  ;;  %v1070_v26 = vld [vmem:[#allocation6 + $0x1f4] ss:$8 sps:$4 sm:$0xff]   ;;  %p1148_p10 = scmp.lt.s32.totalorder %s1413_s26, %s1146_s10  ;;  %p1149_p13 = scmp.lt.s32.totalorder %s1147_s11, %s1141_s9 }
  0x72   : > { %682 = vmatpush1.bf16.msra.mxu0 %v1019_v27  ;;  %642 = vmatprep.subr.bf16.mxu1 %v1020_v28  ;;  %v724_v58 = vsub.s32 0, %v723_v57  ;;  %p1143_p6 = pnand %p1142_p4, %p1332_p12 }
  0x73   : > { %683 = vmatprep.subr.bf16.mxu0 %v1022_v29  ;;  %v220_v17 = vrot.slane %v219_v12, 1  ;;  %v236_v18 = vrot.slane %v235_v13, 1  ;;  %v214_v19 = vadd.f32 %v213_v14, %v212_v8  ;;  %p1150_p3 = por %p1149_p13, %p1148_p10 }
  0x74   : > { %p1144_p8 = pneg %p1143_p6 }
  0x75   : > { %643 = vmatpush1.bf16.msra.mxu1 %v1024_v30  ;;  %v221_v23 = vadd.f32 %v220_v17, %v219_v12  ;;  %v237_v24 = vmax.f32 %v235_v13, %v236_v18  ;;  %v222_v29 = vmul.f32 0.25, %v214_v19  ;;  %v230_v30 = vmax.f32 %v228_v9, %v229_v20 }
  0x76   : > { %684 = vmatpush1.bf16.msra.mxu0 %v1025_v31  ;;  %644 = vmatprep.subr.bf16.mxu1 %v1026_v32  ;;  %v1072_v31 = vld [vmem:[#allocation6 + $0xf0] ss:$8 sps:$4 sm:$0xff]   ;;  %p1151_p7 = pnand %p1150_p3, %p1144_p8 }
  0x77   : > { %685 = vmatprep.subr.bf16.mxu0 %v1028_v33  ;;  %v223_v27 = vmul.f32 0.25, %v221_v23  ;;  %v241_v28 = vpack.c.bf16 %v237_v24, %v237_v24  ;;  %v1073_v32 = vld [vmem:[#allocation6 + $0x1f0] ss:$8 sps:$4 sm:$0xff]  }
  0x79   : > { %645 = vmatpush1.bf16.msra.mxu1 %v1030_v34  ;;  %v239_v33 = vpack.c.bf16 %v223_v27, %v223_v27  ;;  %701 = vmatprep.mubr.bf16.mxu0 %v241_v28  ;;  %v238_v34 = vpack.c.bf16 %v222_v29, %v222_v29 }
  0x7a   : > { %686 = vmatpush1.bf16.msra.mxu0 %v1031_v35  ;;  %646 = vmatprep.subr.bf16.mxu1 %v1032_v36  ;;  %v240_v35 = vpack.c.bf16 %v230_v30, %v230_v30  ;;  %v307_v36 = vstv %s306_s19 }
  0x7b   : > { %687 = vmatprep.subr.bf16.mxu0 %v1034_v37  ;;  %660 = vmatprep.mubr.bf16.mxu1 %v239_v33 }
  0x7d   : > { %647 = vmatpush1.bf16.msra.mxu1 %v1036_v38 }
  0x7e   : > { %688 = vmatpush1.bf16.msra.mxu0 %v1037_v39  ;;  %648 = vmatprep.subr.bf16.mxu1 %v1038_v40 }
  0x7f   : > { %689 = vmatprep.subr.bf16.mxu0 %v1040_v41 }
  0x81   : > { %649 = vmatpush1.bf16.msra.mxu1 %v1042_v42 }
  0x82   : > { %690 = vmatpush1.bf16.msra.mxu0 %v1043_v43  ;;  %650 = vmatprep.subr.bf16.mxu1 %v1044_v44 }
  0x83   : > { %691 = vmatprep.subr.bf16.mxu0 %v1046_v45 }
  0x85   : > { %651 = vmatpush1.bf16.msra.mxu1 %v1048_v50 }
  0x86   : > { %692 = vmatpush1.bf16.msra.mxu0 %v1049_v51  ;;  %652 = vmatprep.subr.bf16.mxu1 %v1050_v54 }
  0x87   : > { %693 = vmatprep.subr.bf16.mxu0 %v1052_v55 }
  0x89   : > { %653 = vmatpush1.bf16.msra.mxu1 %v1054_v62 }
  0x8a   : > { %694 = vmatpush1.bf16.msra.mxu0 %v1055_v63  ;;  %654 = vmatprep.subr.bf16.mxu1 %v1056_v4 }
  0x8b   : > { %695 = vmatprep.subr.bf16.mxu0 %v1058_v5 }
  0x8d   : > { %655 = vmatpush1.bf16.msra.mxu1 %v1060_v10 }
  0x8e   : > { %696 = vmatpush1.bf16.msra.mxu0 %v1061_v11  ;;  %656 = vmatprep.subr.bf16.mxu1 %v1062_v15 }
  0x8f   : > { %697 = vmatprep.subr.bf16.mxu0 %v1064_v16 }
  0x91   : > { %657 = vmatpush1.bf16.msra.mxu1 %v1066_v21 }
  0x92   : > { %698 = vmatpush1.bf16.msra.mxu0 %v1067_v22  ;;  %658 = vmatprep.subr.bf16.mxu1 %v1068_v25 }
  0x93   : > { %699 = vmatprep.subr.bf16.mxu0 %v1070_v26 }
  0x95   : > { %659 = vmatpush1.bf16.msra.mxu1 %v1072_v31 }
  0x96   : > { %700 = vmatpush1.bf16.msra.mxu0 %v1073_v32 }
  0x98   : > { %661 = vmatmul.mubr.bf16.vlgmr.msra.gmra.mrb[0].mxu1 %v238_v34 }
  0x99   : > { %702 = vmatmul.mubr.bf16.vlgmr.msra.gmra.mrb[0].mxu0 %v240_v35 }
 0x16b   : > { %v662_v37 = vpop.f32.mrb[0].mxu1 }
 0x16c   : > { %v703_v38 = vpop.f32.mrb[0].mxu0  ;;  %v663_v39 = vadd.f32 %v662_v37, %v307_v36  ;;  %v664_v40 = vpop.f32.mrb[1].mxu1 }
 0x16d   : > { %v705_v41 = vpop.f32.mrb[1].mxu0  ;;  %v665_v42 = vadd.f32 %v664_v40, %v307_v36  ;;  %v666_v43 = vpop.f32.mrb[2].mxu1 }
 0x16e   : > { %v707_v44 = vpop.f32.mrb[2].mxu0  ;;  %v704_v45 = vadd.f32 %v703_v38, %v663_v39  ;;  %v667_v47 = vpop.f32.mrb[3].mxu1 }
 0x16f   : > { %v708_v48 = vpop.f32.mrb[3].mxu0  ;;  %v706_v49 = vadd.f32 %v705_v41, %v665_v42 }
 0x170   : > { %v906_v50 = vmul.f32 -1.442695, %v704_v45 }
 0x171   : > { %v907_v51 = vmul.f32 -1.442695, %v706_v49 }
 0x172   : > { %1075 = vpow2.f32 %v906_v50 }
 0x173   : > { %1077 = vpow2.f32 %v907_v51 }
 0x17c   : > { %v1076_v52 = vpop.eup %1075 }
 0x17d   : > { %v1078_v53 = vpop.eup %1077  ;;  %v716_v54 = vadd.f32 1.0, %v1076_v52 }
 0x17e   : > { %v717_v55 = vadd.f32 1.0, %v1078_v53 }
 0x17f   : > { %1079 = vrcp.f32 %v716_v54 }
 0x180   : > { %1081 = vrcp.f32 %v717_v55 }
 0x189   : > { %v1080_v59 = vpop.eup %1079 }
 0x18a   : > { %v1082_v60 = vpop.eup %1081  ;;  %v725_v61 = vrot.slane %v1080_v59, %v724_v58 }
 0x18b   : > { %v729_v62 = vrot.slane %v1082_v60, %v724_v58 }
 0x18d   : > { %v732_v63 = vcombine.low %v725_v61, %v729_v62 }
 0x18f   : > { %v734_v0 = vmul.f32 %v732_v63, %v1394_v46 }
 0x191   : > { %735 = vst [vmem:[%s202_s4] sm:$0xff] %v734_v0 }
 0x192   : > { %1154 = shalt.err (!%p1151_p7)
}
 0x193   : > { %s1155_s12 = scalar_lea.hbm %s1411_s7, 128  ;;  %s1159_s29 = scalar_lea.hbm %s1458_s3, 256 }
 0x194   : > { %p1156_p9 = scmp.ne.s32.totalorder %s1411_s7, %s1155_s12  ;;  %p1160_p0 = scmp.lt.u32.totalorder %s1411_s7, %s1458_s3 }
 0x195   : > { %p1161_p11 = scmp.lt.u32.totalorder %s1159_s29, %s1155_s12  ;;  %p1163_p4 = scmp.lt.u32.totalorder %s1155_s12, %s1411_s7 }
 0x196   : > { %p1157_p2 = pnand %p1156_p9, %p1332_p12 }
 0x197   : > { %p1162_p1 = por %p1161_p11, %p1160_p0 }
 0x198   : > { %p1158_p5 = pneg %p1157_p2 }
 0x199   : > { %p1164_p6 = por %p1163_p4, %p1162_p1 }
 0x19b   : > { %p1165_p8 = pnand %p1164_p6, %p1158_p5 }
 0x19d   : > { %1168 = shalt.err (!%p1165_p8)
}
 0x19e   : > { %925 = dma.vmem_to_hbm [thread:$0]  (%p1332_p12), %s1413_s26, 128, %s1411_s7, %s737_s8  }
 0x19f PF: > { %s763_s23 = sand.u32 1, %s1199_s14   ;;  %p1473_p10 = scmp.ne.s32.totalorder %s1463_s20, 0 }
 0x1a0   : > { %p1474_p13 = scmp.ge.s32.totalorder %s1211_s17, 2  ;;  %s764_s6 = scalar_lea.sflag [#allocation5], %s763_s23 }
 0x1a2   : > { %p936_p3 = pnand %p1474_p13, %p1473_p10 }
 0x1a4   : > { %1194 = dma.done.wait (!%p936_p3), %s764_s6, 128  }
 0x1a5   : > { %1196 = vsyncadd (!%p936_p3), %s764_s6, 4294967168  ;;  %p18_p7 = scmp.ge.s32.totalorder %s1297_s25, 4   ;;  %s1475_s14 = smov %s1203_s15 }
 0x1a6   : > { %s1476_s15 = smov %s1207_s16  ;;  %s1477_s16 = smov %s1328_s13 }
 0x1a7   : > { %s1478_s17 = smov %s1297_s25  ;;  %20 = sbr.rel (!%p18_p7) target bundleno = 8 (0x8), region = 81 }
 0x1ae   :  { %769 = vsyncpa [#allocation4], 1 }
 0x1af   :  { %771 = vsyncpa [#allocation4 + $0x1], 1 }
 0x1b0   :  { %772 = vsyncpa [#allocation7], 1 }
 0x1b1   :  { %773 = vsyncpa [#allocation5], 1 }
 0x1b2   :  { %775 = vsyncpa [#allocation5 + $0x1], 1 }

</bundles_post_ra>
